<compile_context>
chip_gen: v7x
topology: tpu7x:2x2x1
jax: 0.10.0
libtpu: 0.0.40
codegen_flags: <defaults>
</compile_context>

<pallas_src>
import math

import jax
import jax.numpy as jnp
from jax.experimental import pallas as pl
from jax.experimental.pallas import tpu as pltpu

D_FEAT = 6
HIDDEN = 128   # module default; keeps every gate group 128-lane aligned
BATCH = 4


def gru_decoder_kernel(xh_ref, h_ref, wg_ref, bg_ref, wfc_ref, bfc_ref,
                       pred_ref, hout_ref):
    H = h_ref.shape[1]
    h = h_ref[...]                                            # (B, H)

    # Single fused gate matmul: (B, F+H) @ (F+H, 4H) -> (B, 4H)
    g = jnp.dot(xh_ref[...], wg_ref[...],
                preferred_element_type=jnp.float32) + bg_ref[...]

    # 128-lane-aligned column groups: [r | z | n_i | n_h]
    r = jax.nn.sigmoid(g[:, 0:H])           # input+hidden parts already summed
    z = jax.nn.sigmoid(g[:, H:2 * H])
    n = jnp.tanh(g[:, 2 * H:3 * H] + r * g[:, 3 * H:4 * H])

    h_new = (1.0 - z) * n + z * h                             # (B, H)
    hout_ref[...] = h_new

    # fc head: pred = h_new @ W_fc^T + b_fc                   # (B, F)
    pred_ref[...] = (
        jnp.dot(h_new, wfc_ref[...], preferred_element_type=jnp.float32)
        + bfc_ref[...]
    )


def decoder_forward(x, hidden, kparams):
    """x: (B, F) f32; hidden: (1, B, H) f32. Returns (pred (B, F), hidden' (1, B, H))."""
    B, F = x.shape
    H = hidden.shape[-1]
    h0 = hidden[0]                                            # (B, H)
    xh = jnp.concatenate([x, h0], axis=1)                     # (B, F+H) fused operand

    vmem = pl.BlockSpec(memory_space=pltpu.MemorySpace.VMEM)
    pred, h_new = pl.pallas_call(
        gru_decoder_kernel,
        out_shape=(
            jax.ShapeDtypeStruct((B, F), jnp.float32),
            jax.ShapeDtypeStruct((B, H), jnp.float32),
        ),
        in_specs=[vmem] * 6,
        out_specs=(vmem, vmem),
        input_output_aliases={1: 1},                          # h buffer reused in place
    )(xh, h0, kparams["w_gate"], kparams["b_gate"],
      kparams["w_fc"], kparams["b_fc"])
    return pred, h_new[None]                                  # hidden back to (1, B, H)


def init_params(key, d_feat=D_FEAT, hidden=HIDDEN):
    """PyTorch-layout parameters (uniform +-1/sqrt(hidden), like nn.GRU/nn.Linear)."""
    ks = jax.random.split(key, 6)
    bound = 1.0 / math.sqrt(hidden)
    u = lambda k, shape: jax.random.uniform(k, shape, jnp.float32, -bound, bound)
    return {
        "w_ih": u(ks[0], (3 * hidden, d_feat)),   # [W_ir; W_iz; W_in]
        "w_hh": u(ks[1], (3 * hidden, hidden)),   # [W_hr; W_hz; W_hn]
        "b_ih": u(ks[2], (3 * hidden,)),
        "b_hh": u(ks[3], (3 * hidden,)),
        "w_fc": u(ks[4], (d_feat, hidden)),       # nn.Linear(hidden, d_feat).weight
        "b_fc": u(ks[5], (d_feat,)),
    }


def pack_params(p):
    """Pack PyTorch-layout params into the fused kernel layout.

    w_gate: (F+H, 4H) with column groups [r | z | n_i | n_h]. The r/z groups
    carry both input and hidden weights (their pre-activations may be summed),
    and their biases are pre-summed; the n contributions stay in separate
    groups because n = tanh(gi_n + r * (gh_n + b_hn)).
    """
    w_ih, w_hh = p["w_ih"], p["w_hh"]
    H = w_hh.shape[1]
    F = w_ih.shape[1]
    w_ir, w_iz, w_in = w_ih[:H], w_ih[H:2 * H], w_ih[2 * H:]
    w_hr, w_hz, w_hn = w_hh[:H], w_hh[H:2 * H], w_hh[2 * H:]
    b_ir, b_iz, b_in = p["b_ih"][:H], p["b_ih"][H:2 * H], p["b_ih"][2 * H:]
    b_hr, b_hz, b_hn = p["b_hh"][:H], p["b_hh"][H:2 * H], p["b_hh"][2 * H:]

    x_rows = jnp.concatenate(
        [w_ir.T, w_iz.T, w_in.T, jnp.zeros((F, H), jnp.float32)], axis=1)   # (F, 4H)
    h_rows = jnp.concatenate(
        [w_hr.T, w_hz.T, jnp.zeros((H, H), jnp.float32), w_hn.T], axis=1)   # (H, 4H)
    w_gate = jnp.concatenate([x_rows, h_rows], axis=0)                      # (F+H, 4H)
    b_gate = jnp.concatenate([b_ir + b_hr, b_iz + b_hz, b_in, b_hn])[None]  # (1, 4H)
    return {
        "w_gate": w_gate,
        "b_gate": b_gate,
        "w_fc": p["w_fc"].T,           # (H, F) for right-multiplication
        "b_fc": p["b_fc"][None, :],    # (1, F)
    }


def decoder_reference(x, hidden, p):
    """Pure-JAX reference matching PyTorch nn.GRU(+Linear) exactly (unfused)."""
    h = hidden[0]
    H = h.shape[1]
    gi = x @ p["w_ih"].T + p["b_ih"]
    gh = h @ p["w_hh"].T + p["b_hh"]
    r = jax.nn.sigmoid(gi[:, :H] + gh[:, :H])
    z = jax.nn.sigmoid(gi[:, H:2 * H] + gh[:, H:2 * H])
    n = jnp.tanh(gi[:, 2 * H:] + r * gh[:, 2 * H:])
    h_new = (1.0 - z) * n + z * h
    pred = h_new @ p["w_fc"].T + p["b_fc"]
    return pred, h_new[None]


if __name__ == "__main__":
    key = jax.random.PRNGKey(0)
    k_x, k_h, k_p = jax.random.split(key, 3)

    x = jax.random.normal(k_x, (BATCH, D_FEAT), jnp.float32)
    hidden = jax.random.normal(k_h, (1, BATCH, HIDDEN), jnp.float32)
    torch_params = init_params(k_p)
    kernel_params = pack_params(torch_params)

    # Reference first (the kernel aliases/donates its own h0 copy, not `hidden`).
    pred_ref, hidden_ref = decoder_reference(x, hidden, torch_params)

    fwd = jax.jit(decoder_forward)
    pred, new_hidden = fwd(x, hidden, kernel_params)
    jax.block_until_ready((pred, new_hidden))

    assert pred.shape == (BATCH, D_FEAT)
    assert new_hidden.shape == (1, BATCH, HIDDEN)
    assert jnp.allclose(pred, pred_ref, atol=1e-4, rtol=1e-4), "pred mismatch"
    assert jnp.allclose(new_hidden, hidden_ref, atol=1e-4, rtol=1e-4), "hidden mismatch"

    print("KERNEL_OK")
</pallas_src>

<mosaic_0001>
module attributes {stable_mosaic.version = 11 : i64} {
  func.func @gru_decoder_kernel(%arg0: memref<4x134xf32, #tpu.memory_space<vmem>>, %arg1: memref<4x128xf32, #tpu.memory_space<vmem>>, %arg2: memref<134x512xf32, #tpu.memory_space<vmem>>, %arg3: memref<1x512xf32, #tpu.memory_space<vmem>>, %arg4: memref<128x6xf32, #tpu.memory_space<vmem>>, %arg5: memref<1x6xf32, #tpu.memory_space<vmem>>, %arg6: memref<4x6xf32, #tpu.memory_space<vmem>>, %arg7: memref<4x128xf32, #tpu.memory_space<vmem>>) attributes {dimension_semantics = [], scalar_prefetch = 0 : i64, scratch_operands = 0 : i64, tpu.core_type = #tpu.core_type<tc>} {
    %c0 = arith.constant 0 : index
    %c0_0 = arith.constant 0 : index
    %0 = vector.load %arg1[%c0, %c0_0] : memref<4x128xf32, #tpu.memory_space<vmem>>, vector<4x128xf32>
    %c0_1 = arith.constant 0 : index
    %c0_2 = arith.constant 0 : index
    %1 = vector.load %arg0[%c0_1, %c0_2] : memref<4x134xf32, #tpu.memory_space<vmem>>, vector<4x134xf32>
    %c0_3 = arith.constant 0 : index
    %c0_4 = arith.constant 0 : index
    %2 = vector.load %arg2[%c0_3, %c0_4] : memref<134x512xf32, #tpu.memory_space<vmem>>, vector<134x512xf32>
    %cst = arith.constant dense<0.000000e+00> : vector<4x512xf32>
    %3 = tpu.matmul %1, %2, %cst {dimension_numbers = #tpu.dot_dimension_numbers<[1], [0], [0], [1], [0, 0, 1, 1], [], []>} : vector<4x134xf32>, vector<134x512xf32>, vector<4x512xf32> -> vector<4x512xf32>
    %c0_5 = arith.constant 0 : index
    %c0_6 = arith.constant 0 : index
    %4 = vector.load %arg3[%c0_5, %c0_6] : memref<1x512xf32, #tpu.memory_space<vmem>>, vector<1x512xf32>
    %5 = vector.broadcast %4 : vector<1x512xf32> to vector<4x512xf32>
    %6 = arith.addf %3, %5 : vector<4x512xf32>
    %7 = vector.extract_strided_slice %6 {offsets = [0, 0], sizes = [4, 128], strides = [1, 1]} : vector<4x512xf32> to vector<4x128xf32>
    %8 = arith.negf %7 : vector<4x128xf32>
    %9 = math.exp %8 : vector<4x128xf32>
    %cst_7 = arith.constant 1.000000e+00 : f32
    %10 = vector.broadcast %cst_7 : f32 to vector<4x128xf32>
    %11 = arith.addf %10, %9 : vector<4x128xf32>
    %12 = arith.divf %10, %11 : vector<4x128xf32>
    %13 = vector.extract_strided_slice %6 {offsets = [0, 128], sizes = [4, 128], strides = [1, 1]} : vector<4x512xf32> to vector<4x128xf32>
    %14 = arith.negf %13 : vector<4x128xf32>
    %15 = math.exp %14 : vector<4x128xf32>
    %cst_8 = arith.constant 1.000000e+00 : f32
    %16 = vector.broadcast %cst_8 : f32 to vector<4x128xf32>
    %17 = arith.addf %16, %15 : vector<4x128xf32>
    %18 = arith.divf %16, %17 : vector<4x128xf32>
    %19 = vector.extract_strided_slice %6 {offsets = [0, 256], sizes = [4, 128], strides = [1, 1]} : vector<4x512xf32> to vector<4x128xf32>
    %20 = vector.extract_strided_slice %6 {offsets = [0, 384], sizes = [4, 128], strides = [1, 1]} : vector<4x512xf32> to vector<4x128xf32>
    %21 = arith.mulf %12, %20 : vector<4x128xf32>
    %22 = arith.addf %19, %21 : vector<4x128xf32>
    %23 = math.tanh %22 : vector<4x128xf32>
    %cst_9 = arith.constant 1.000000e+00 : f32
    %24 = vector.broadcast %cst_9 : f32 to vector<4x128xf32>
    %25 = arith.subf %24, %18 : vector<4x128xf32>
    %26 = arith.mulf %25, %23 : vector<4x128xf32>
    %27 = arith.mulf %18, %0 : vector<4x128xf32>
    %28 = arith.addf %26, %27 : vector<4x128xf32>
    %c0_10 = arith.constant 0 : index
    %c0_11 = arith.constant 0 : index
    %29 = vector.load %arg7[%c0_10, %c0_11] : memref<4x128xf32, #tpu.memory_space<vmem>>, vector<4x128xf32>
    tpu.vector_store %arg7[%c0_10, %c0_11], %28 {strides = array<i32>} : memref<4x128xf32, #tpu.memory_space<vmem>>, vector<4x128xf32>,
    %c0_12 = arith.constant 0 : index
    %c0_13 = arith.constant 0 : index
    %30 = vector.load %arg4[%c0_12, %c0_13] : memref<128x6xf32, #tpu.memory_space<vmem>>, vector<128x6xf32>
    %cst_14 = arith.constant dense<0.000000e+00> : vector<4x6xf32>
    %31 = tpu.matmul %28, %30, %cst_14 {dimension_numbers = #tpu.dot_dimension_numbers<[1], [0], [0], [1], [0, 0, 1, 1], [], []>} : vector<4x128xf32>, vector<128x6xf32>, vector<4x6xf32> -> vector<4x6xf32>
    %c0_15 = arith.constant 0 : index
    %c0_16 = arith.constant 0 : index
    %32 = vector.load %arg5[%c0_15, %c0_16] : memref<1x6xf32, #tpu.memory_space<vmem>>, vector<1x6xf32>
    %33 = vector.broadcast %32 : vector<1x6xf32> to vector<4x6xf32>
    %34 = arith.addf %31, %33 : vector<4x6xf32>
    %c0_17 = arith.constant 0 : index
    %c0_18 = arith.constant 0 : index
    %35 = vector.load %arg6[%c0_17, %c0_18] : memref<4x6xf32, #tpu.memory_space<vmem>>, vector<4x6xf32>
    tpu.vector_store %arg6[%c0_17, %c0_18], %34 {strides = array<i32>} : memref<4x6xf32, #tpu.memory_space<vmem>>, vector<4x6xf32>,
    return
  }
}

</mosaic_0001>

<bundles_post_ra>
// kernel: decoder_forward.1
= control target key start
LH: loop header
LB: loop body
LE: loop exit
PB: predicated region body
PF: predicated region fallthrough
CT: control target
= control target key end

     0   :  { %13 = vsyncpa [#allocation3], 0  ;;  %s787_s0 = inlined_call_operand.vmem [shape: f32[4,134], index: 0, kind: input, shape index: {}]   ;;  %s788_s1 = inlined_call_operand.vmem [shape: f32[4,128], index: 1, kind: input, shape index: {}, may-alias: {1,7}]   ;;  %s789_s2 = inlined_call_operand.hbm [shape: f32[134,512], index: 2, kind: input, shape index: {}]   ;;  %s790_s3 = inlined_call_operand.vmem [shape: f32[1,512], index: 3, kind: input, shape index: {}]   ;;  %s791_s4 = inlined_call_operand.vmem [shape: f32[128,6], index: 4, kind: input, shape index: {}]   ;;  %s792_s5 = inlined_call_operand.vmem [shape: f32[1,6], index: 5, kind: input, shape index: {}]   ;;  %s793_s6 = inlined_call_operand.hbm [shape: f32[4,6], index: 6, kind: output, shape index: {0}]   ;;  %s794_s7 = inlined_call_operand.vmem [shape: f32[4,128], index: 7, kind: output, shape index: {1}, may-alias: {1,7}]  }
   0x1   :  { %14 = vsyncpa [#allocation4], 0  ;;  %s641_s24 = smov [#allocation2]   ;;  %s593_s28 = scalar_lea.hbm %s789_s2, 8704 }
   0x2   :  { %s24_s25 = sshll.u32 %s641_s24, 4  ;;  %p594_p0 = scmp.ne.s32.totalorder %s789_s2, %s593_s28  ;;  %s25_s25 = int_to_ptr.vmem [resolvable:$true] %s24_s25 }
   0x3   :  { %p597_p1 = scmp.lt.u32.totalorder %s593_s28, %s789_s2 }
   0x5   :  { %p599_p2 = pnand %p597_p1, %p594_p0 }
   0x7   :  { %602 = shalt.err (!%p599_p2)
}
   0x8   :  { %s603_s10 = scalar_lea.vmem %s25_s25, 8704  ;;  %p608_p4 = scmp.lt.s32.totalorder %s25_s25, %s25_s25 }
   0x9   :  { %p604_p3 = scmp.ne.s32.totalorder %s25_s25, %s603_s10  ;;  %p609_p5 = scmp.lt.s32.totalorder %s603_s10, %s603_s10 }
   0xb   :  { %p610_p6 = por %p609_p5, %p608_p4 }
   0xd   :  { %p611_p7 = pnand %p610_p6, %p604_p3 }
   0xf   :  { %614 = shalt.err (!%p611_p7)
}
  0x10   :  { %s642_s11 = smov 512   ;;  %s643_s12 = smov 32  }
  0x11   :  { %30 = dma.hbm_to_vmem [thread:$0]  %s789_s2, 8704, %s25_s25, [#allocation3], %s642_s11, %s642_s11, %s643_s12  }
  0x12   :  { %637 = dma.done.wait [#allocation3], 8704  }
  0x13   :  { %638 = vsyncadd [#allocation3], 4294958592  ;;  %v43_v0 = vld [vmem:[#allocation2 + $0x8] sm:$0xff]  ;;  %v42_v2 = vld [vmem:[#allocation2] sm:$0xff]  ;;  %vm134_vm0 = vcmask 48128   ;;  %vm137_vm1 = vcmask 1045504  }
  0x14   :  { %v47_v1 = vld [vmem:[#allocation2 + $0x28] sm:$0xff]  ;;  %v46_v4 = vld [vmem:[#allocation2 + $0x20] sm:$0xff]  ;;  %v45_v21 = vld [vmem:[#allocation2 + $0x18] sm:$0xff]  ;;  %vm645_vm2 = vmmov 0   ;;  %s647_s28 = smov [#allocation5]   ;;  %vm405_vm3 = vcmask 44032  }
  0x15   :  { %v487_v3 = vpack.c.bf16 %v47_v1, %v43_v0  ;;  %v51_v5 = vld [vmem:[#allocation2 + $0x48] sm:$0xff]  ;;  %v489_v7 = vpack.c.bf16 %v46_v4, %v42_v2  ;;  %v50_v9 = vld [vmem:[#allocation2 + $0x40] sm:$0xff]  ;;  %v49_v25 = vld [vmem:[#allocation2 + $0x38] sm:$0xff]  ;;  %s413_s29 = sshll.u32 %s647_s28, 4  ;;  %s414_s29 = int_to_ptr.vmem [resolvable:$true] %s413_s29 }
  0x16   :  { %v55_v6 = vld [vmem:[#allocation2 + $0x68] sm:$0xff]  ;;  %v54_v10 = vld [vmem:[#allocation2 + $0x60] sm:$0xff]  ;;  %v519_v27 = vpack.c.bf16 %v49_v25, %v45_v21  ;;  %v44_v28 = vld [vmem:[#allocation2 + $0x10] sm:$0xff]  ;;  %p620_p9 = scmp.lt.s32.totalorder %s414_s29, %s414_s29 }
  0x17   :  { %v491_v8 = vpack.c.bf16 %v55_v6, %v51_v5  ;;  %v59_v11 = vld [vmem:[#allocation2 + $0x88] sm:$0xff]  ;;  %488 = vmatprep.subr.bf16.mxu0 %v487_v3  ;;  %v493_v13 = vpack.c.bf16 %v54_v10, %v50_v9  ;;  %v58_v15 = vld [vmem:[#allocation2 + $0x80] sm:$0xff]  ;;  %v48_v29 = vld [vmem:[#allocation2 + $0x30] sm:$0xff] }
  0x18   :  { %v63_v12 = vld [vmem:[#allocation2 + $0xa8] sm:$0xff]  ;;  %490 = vmatpush1.bf16.msra.mxu0 %v489_v7  ;;  %v62_v16 = vld [vmem:[#allocation2 + $0xa0] sm:$0xff]  ;;  %v521_v30 = vpack.c.bf16 %v48_v29, %v44_v28  ;;  %v53_v31 = vld [vmem:[#allocation2 + $0x58] sm:$0xff]  ;;  %520 = vmatprep.subr.bf16.mxu1 %v519_v27 }
  0x19   :  { %492 = vmatprep.subr.bf16.mxu0 %v491_v8  ;;  %v495_v14 = vpack.c.bf16 %v63_v12, %v59_v11  ;;  %v67_v17 = vld [vmem:[#allocation2 + $0xc8] sm:$0xff]  ;;  %v497_v19 = vpack.c.bf16 %v62_v16, %v58_v15  ;;  %v66_v20 = vld [vmem:[#allocation2 + $0xc0] sm:$0xff]  ;;  %v57_v32 = vld [vmem:[#allocation2 + $0x78] sm:$0xff] }
  0x1a   :  { %v71_v18 = vld [vmem:[#allocation2 + $0xe8] sm:$0xff]  ;;  %v70_v23 = vld [vmem:[#allocation2 + $0xe0] sm:$0xff]  ;;  %v523_v36 = vpack.c.bf16 %v57_v32, %v53_v31  ;;  %v52_v37 = vld [vmem:[#allocation2 + $0x50] sm:$0xff]  ;;  %522 = vmatpush1.bf16.msra.mxu1 %v521_v30 }
  0x1b   :  { %v499_v22 = vpack.c.bf16 %v71_v18, %v67_v17  ;;  %v75_v24 = vld [vmem:[#allocation2 + $0x108] sm:$0xff]  ;;  %v501_v33 = vpack.c.bf16 %v70_v23, %v66_v20  ;;  %v74_v34 = vld [vmem:[#allocation2 + $0x100] sm:$0xff]  ;;  %v56_v40 = vld [vmem:[#allocation2 + $0x70] sm:$0xff] }
  0x1c   :  { %494 = vmatpush1.bf16.msra.mxu0 %v493_v13  ;;  %v79_v26 = vld [vmem:[#allocation2 + $0x128] sm:$0xff]  ;;  %v78_v35 = vld [vmem:[#allocation2 + $0x120] sm:$0xff]  ;;  %v61_v41 = vld [vmem:[#allocation2 + $0x98] sm:$0xff]  ;;  %524 = vmatprep.subr.bf16.mxu1 %v523_v36  ;;  %v525_v43 = vpack.c.bf16 %v56_v40, %v52_v37 }
  0x1d   :  { %496 = vmatprep.subr.bf16.mxu0 %v495_v14  ;;  %v503_v38 = vpack.c.bf16 %v79_v26, %v75_v24  ;;  %v83_v39 = vld [vmem:[#allocation2 + $0x148] sm:$0xff]  ;;  %v65_v44 = vld [vmem:[#allocation2 + $0xb8] sm:$0xff]  ;;  %v703_v45 = vld [vmem:[%s787_s0] sm:$0xff]  ;;  %v505_v51 = vpack.c.bf16 %v78_v35, %v74_v34 }
  0x1e   :  { %v87_v42 = vld [vmem:[#allocation2 + $0x168] sm:$0xff]  ;;  %v527_v46 = vpack.c.bf16 %v65_v44, %v61_v41  ;;  %v133_v47 = vcombine.high %v703_v45, %v703_v45  ;;  %v60_v48 = vld [vmem:[#allocation2 + $0x90] sm:$0xff]  ;;  %v69_v50 = vld [vmem:[#allocation2 + $0xd8] sm:$0xff]  ;;  %526 = vmatpush1.bf16.msra.mxu1 %v525_v43  ;;  %v644_v41 = vmov 0.0|0.0  }
  0x1f   :  { %v64_v49 = vld [vmem:[#allocation2 + $0xb0] sm:$0xff]  ;;  %v73_v52 = vld [vmem:[#allocation2 + $0xf8] sm:$0xff]  ;;  %v507_v53 = vpack.c.bf16 %v87_v42, %v83_v39  ;;  %v82_v54 = vld [vmem:[#allocation2 + $0x140] sm:$0xff] }
  0x20   :  { %498 = vmatpush1.bf16.msra.mxu0 %v497_v19  ;;  %v86_v55 = vld [vmem:[#allocation2 + $0x160] sm:$0xff]  ;;  %v91_v56 = vld [vmem:[#allocation2 + $0x188] sm:$0xff]  ;;  %v529_v57 = vpack.c.bf16 %v64_v49, %v60_v48  ;;  %528 = vmatprep.subr.bf16.mxu1 %v527_v46  ;;  %v531_v59 = vpack.c.bf16 %v73_v52, %v69_v50  ;;  %v68_v60 = vld [vmem:[#allocation2 + $0xd0] sm:$0xff] }
  0x21   :  { %500 = vmatprep.subr.bf16.mxu0 %v499_v22  ;;  %v95_v58 = vld [vmem:[#allocation2 + $0x1a8] sm:$0xff]  ;;  %428 = vmatprep.mubr.msk.f32.mxu0 %vm134_vm0, %v133_v47  ;;  %v72_v61 = vld [vmem:[#allocation2 + $0xf0] sm:$0xff]  ;;  %v77_v62 = vld [vmem:[#allocation2 + $0x118] sm:$0xff]  ;;  %v509_v0 = vpack.c.bf16 %v86_v55, %v82_v54 }
  0x22   :  { %v81_v63 = vld [vmem:[#allocation2 + $0x138] sm:$0xff]  ;;  %431 = vmatprep.mubr.msk.f32.mxu1 %vm134_vm0, %v133_v47  ;;  %v511_v1 = vpack.c.bf16 %v95_v58, %v91_v56  ;;  %v90_v2 = vld [vmem:[#allocation2 + $0x180] sm:$0xff]  ;;  %v99_v4 = vld [vmem:[#allocation2 + $0x1c8] sm:$0xff]  ;;  %530 = vmatpush1.bf16.msra.mxu1 %v529_v57  ;;  %v533_v5 = vpack.c.bf16 %v72_v61, %v68_v60 }
  0x23   :  { %v94_v3 = vld [vmem:[#allocation2 + $0x1a0] sm:$0xff]  ;;  %v103_v6 = vld [vmem:[#allocation2 + $0x1e8] sm:$0xff]  ;;  %532 = vmatprep.subr.bf16.mxu1 %v531_v59  ;;  %v535_v7 = vpack.c.bf16 %v81_v63, %v77_v62  ;;  %v76_v8 = vld [vmem:[#allocation2 + $0x110] sm:$0xff]  ;;  %v646_v59 = vmov 0.0  }
  0x24   :  { %502 = vmatpush1.bf16.msra.mxu0 %v501_v33  ;;  %v80_v9 = vld [vmem:[#allocation2 + $0x130] sm:$0xff]  ;;  %v85_v10 = vld [vmem:[#allocation2 + $0x158] sm:$0xff]  ;;  %v513_v12 = vpack.c.bf16 %v94_v3, %v90_v2  ;;  %v515_v13 = vpack.c.bf16 %v103_v6, %v99_v4  ;;  %v98_v14 = vld [vmem:[#allocation2 + $0x1c0] sm:$0xff] }
  0x25   :  { %504 = vmatprep.subr.bf16.mxu0 %v503_v38  ;;  %v89_v11 = vld [vmem:[#allocation2 + $0x178] sm:$0xff]  ;;  %v102_v15 = vld [vmem:[#allocation2 + $0x1e0] sm:$0xff]  ;;  %v537_v16 = vpack.c.bf16 %v80_v9, %v76_v8  ;;  %v84_v18 = vld [vmem:[#allocation2 + $0x150] sm:$0xff] }
  0x26   :  { %534 = vmatpush1.bf16.msra.mxu1 %v533_v5  ;;  %v539_v17 = vpack.c.bf16 %v89_v11, %v85_v10  ;;  %v88_v19 = vld [vmem:[#allocation2 + $0x170] sm:$0xff]  ;;  %v93_v20 = vld [vmem:[#allocation2 + $0x198] sm:$0xff]  ;;  %v517_v22 = vpack.c.bf16 %v102_v15, %v98_v14  ;;  %v107_v24 = vld [vmem:[#allocation2 + $0x208] sm:$0x3f] }
  0x27   :  { %536 = vmatprep.subr.bf16.mxu1 %v535_v7  ;;  %v97_v21 = vld [vmem:[#allocation2 + $0x1b8] sm:$0xff]  ;;  %v541_v23 = vpack.c.bf16 %v88_v19, %v84_v18  ;;  %v92_v26 = vld [vmem:[#allocation2 + $0x190] sm:$0xff]  ;;  %v106_v30 = vld [vmem:[#allocation2 + $0x200] sm:$0x3f] }
  0x28   :  { %506 = vmatpush1.bf16.msra.mxu0 %v505_v51  ;;  %v543_v25 = vpack.c.bf16 %v97_v21, %v93_v20  ;;  %v96_v27 = vld [vmem:[#allocation2 + $0x1b0] sm:$0xff]  ;;  %v101_v28 = vld [vmem:[#allocation2 + $0x1d8] sm:$0xff]  ;;  %v312_v38 = vld [vmem:[%s791_s4] sm:$0xff] }
  0x29   :  { %508 = vmatprep.subr.bf16.mxu0 %v507_v53  ;;  %v105_v29 = vld [vmem:[#allocation2 + $0x1f8] sm:$0xff]  ;;  %v545_v31 = vpack.c.bf16 %v96_v27, %v92_v26  ;;  %v100_v33 = vld [vmem:[#allocation2 + $0x1d0] sm:$0xff]  ;;  %v313_v39 = vld [vmem:[%s791_s4 + $0x8] sm:$0xff] }
  0x2a   :  { %538 = vmatpush1.bf16.msra.mxu1 %v537_v16  ;;  %v547_v32 = vpack.c.bf16 %v105_v29, %v101_v28  ;;  %v104_v34 = vld [vmem:[#allocation2 + $0x1f0] sm:$0xff]  ;;  %v109_v36 = vld [vmem:[#allocation2 + $0x218] sm:$0x3f]  ;;  %v552_v40 = vpack.c.bf16 %v313_v39, %v312_v38  ;;  %v317_v46 = vld [vmem:[%s791_s4 + $0x28] sm:$0xff] }
  0x2b   :  { %540 = vmatprep.subr.bf16.mxu1 %v539_v17  ;;  %v549_v35 = vpack.c.bf16 %v104_v34, %v100_v33  ;;  %v108_v37 = vld [vmem:[#allocation2 + $0x210] sm:$0x3f]  ;;  %v315_v43 = vld [vmem:[%s791_s4 + $0x18] sm:$0xff]  ;;  %v320_v51 = vld [vmem:[%s791_s4 + $0x40] sm:$0xff] }
  0x2c   :  { %510 = vmatpush1.bf16.msra.mxu0 %v509_v0  ;;  %v314_v42 = vld [vmem:[%s791_s4 + $0x10] sm:$0xff]  ;;  %v319_v49 = vld [vmem:[%s791_s4 + $0x38] sm:$0xff]  ;;  %v321_v52 = vld [vmem:[%s791_s4 + $0x48] sm:$0xff]  ;;  %v112_v0 = vlaneseq }
  0x2d   :  { %512 = vmatprep.subr.bf16.mxu0 %v511_v1  ;;  %v555_v44 = vpack.c.bf16 %v315_v43, %v314_v42  ;;  %v318_v48 = vld [vmem:[%s791_s4 + $0x30] sm:$0xff]  ;;  %v564_v53 = vpack.c.bf16 %v321_v52, %v320_v51  ;;  %v323_v55 = vld [vmem:[%s791_s4 + $0x58] sm:$0xff]  ;;  %v324_v57 = vld [vmem:[%s791_s4 + $0x60] sm:$0xff] }
  0x2e   :  { %542 = vmatpush1.bf16.msra.mxu1 %v541_v23  ;;  %v561_v50 = vpack.c.bf16 %v319_v49, %v318_v48  ;;  %v322_v54 = vld [vmem:[%s791_s4 + $0x50] sm:$0xff]  ;;  %v325_v58 = vld [vmem:[%s791_s4 + $0x68] sm:$0xff]  ;;  %v327_v62 = vld [vmem:[%s791_s4 + $0x78] sm:$0xff]  ;;  %v113_v1 = vshrl.u32 %v112_v0, 7 }
  0x2f   :  { %544 = vmatprep.subr.bf16.mxu1 %v543_v25  ;;  %v567_v56 = vpack.c.bf16 %v323_v55, %v322_v54  ;;  %v570_v60 = vpack.c.bf16 %v325_v58, %v324_v57  ;;  %v326_v61 = vld [vmem:[%s791_s4 + $0x70] sm:$0xff]  ;;  %v110_v3 = vld [vmem:[%s790_s3] sm:$0xf] }
  0x30   :  { %514 = vmatpush1.bf16.msra.mxu0 %v513_v12  ;;  %v573_v63 = vpack.c.bf16 %v327_v62, %v326_v61  ;;  %v114_v2 = vsub.s32 0, %v113_v1  ;;  %v118_v4 = vsub.s32 1, %v113_v1  ;;  %v126_v17 = vsub.s32 3, %v113_v1  ;;  %v40_v29 = vld [vmem:[%s788_s1] sm:$0xf]  ;;  %s615_s1 = scalar_lea.vmem %s414_s29, 64 }
  0x31   :  { %516 = vmatprep.subr.bf16.mxu0 %v515_v13  ;;  %v122_v18 = vsub.s32 2, %v113_v1  ;;  %p616_p8 = scmp.ne.s32.totalorder %s414_s29, %s615_s1  ;;  %p621_p10 = scmp.lt.s32.totalorder %s615_s1, %s615_s1 }
  0x32   :  { %546 = vmatpush1.bf16.msra.mxu1 %v545_v31  ;;  %v115_v5 = vrot.slane %v110_v3, %v114_v2  ;;  %v119_v7 = vrot.slane %v110_v3, %v118_v4  ;;  %v127_v19 = vrot.slane %v110_v3, %v126_v17 }
  0x33   :  { %548 = vmatprep.subr.bf16.mxu1 %v547_v32  ;;  %p622_p11 = por %p621_p10, %p620_p9 }
  0x34   :  { %518 = vmatpush1.bf16.msra.mxu0 %v517_v22  ;;  %v123_v22 = vrot.slane %v110_v3, %v122_v18 }
  0x35   :  { %426 = vmatprep.subr.msk.mxu0 %vm137_vm1, %v107_v24  ;;  %p623_p12 = pnand %p622_p11, %p616_p8 }
  0x36   :  { %550 = vmatpush1.bf16.msra.mxu1 %v549_v35  ;;  %v434_v35 = vld [vmem:[%s792_s5] ss:$0 sm:$0xff] }
  0x37   :  { %429 = vmatprep.subr.msk.mxu1 %vm137_vm1, %v109_v36 }
  0x38   :  { %427 = vmatpush1.msk.msra.mxu0 %vm137_vm1, %v106_v30 }
  0x39   :  { %215 = vmatmul.mubr.f32.vlgmr.msra.gmra.mrb[0].mxu0 %v703_v45  ;;  %551 = vmatprep.subr.bf16.mxu0 %v644_v41 }
  0x3a   :  { %430 = vmatpush1.msk.msra.mxu1 %vm137_vm1, %v108_v37  ;;  %553 = vmatpush3.bf16.msra.mxu0 %v552_v40 }
  0x3b   :  { %286 = vmatmul.mubr.f32.vlgmr.msra.gmra.mrb[0].mxu1 %v703_v45  ;;  %554 = vmatprep.subr.bf16.mxu0 %v644_v41  ;;  %v316_v45 = vld [vmem:[%s791_s4 + $0x20] sm:$0xff] }
  0x3c   :  { %v558_v47 = vpack.c.bf16 %v317_v46, %v316_v45  ;;  %484 = vmatprep.mubr.msk.f32.mxu0 %vm645_vm2, %v646_v59 }
  0x3e   :  { %556 = vmatpush3.bf16.msra.mxu0 %v555_v44 }
  0x3f   :  { %557 = vmatprep.subr.bf16.mxu0 %v644_v41 }
  0x42   :  { %559 = vmatpush3.bf16.msra.mxu0 %v558_v47 }
  0x43   :  { %560 = vmatprep.subr.bf16.mxu0 %v644_v41 }
  0x46   :  { %562 = vmatpush3.bf16.msra.mxu0 %v561_v50 }
  0x47   :  { %563 = vmatprep.subr.bf16.mxu0 %v644_v41 }
  0x4a   :  { %565 = vmatpush3.bf16.msra.mxu0 %v564_v53 }
  0x4b   :  { %566 = vmatprep.subr.bf16.mxu0 %v644_v41 }
  0x4e   :  { %568 = vmatpush3.bf16.msra.mxu0 %v567_v56 }
  0x4f   :  { %569 = vmatprep.subr.bf16.mxu0 %v644_v41 }
  0x52   :  { %571 = vmatpush3.bf16.msra.mxu0 %v570_v60 }
  0x53   :  { %572 = vmatprep.subr.bf16.mxu0 %v644_v41 }
  0x56   :  { %574 = vmatpush3.bf16.msra.mxu0 %v573_v63 }
 0x10c   :  { %v216_v6 = vpop.f32.mrb[0].mxu0 }
 0x10d   :  { %v217_v8 = vadd.f32 %v216_v6, %v115_v5  ;;  %v218_v9 = vpop.f32.mrb[1].mxu0 }
 0x10e   :  { %v219_v11 = vadd.f32 %v218_v9, %v119_v7  ;;  %v287_v13 = vpop.f32.mrb[0].mxu1 }
 0x10f   :  { %v432_v10 = vmul.f32 -1.442695, %v217_v8  ;;  %v289_v14 = vpop.f32.mrb[1].mxu1  ;;  %v288_v25 = vadd.f32 %v287_v13, %v123_v22 }
 0x110   :  { %v433_v12 = vmul.f32 -1.442695, %v219_v11  ;;  %v290_v23 = vadd.f32 %v289_v14, %v127_v19 }
 0x111   :  { %583 = vpow2.f32 %v432_v10 }
 0x112   :  { %585 = vpow2.f32 %v433_v12 }
 0x11b   :  { %v584_v15 = vpop.eup %583 }
 0x11c   :  { %v295_v16 = vadd.f32 1.0, %v584_v15  ;;  %v586_v20 = vpop.eup %585 }
 0x11d   :  { %v301_v21 = vadd.f32 1.0, %v586_v20 }
 0x11e   :  { %587 = vrcp.f32 %v295_v16 }
 0x11f   :  { %589 = vrcp.f32 %v301_v21 }
 0x128   :  { %v588_v24 = vpop.eup %587 }
 0x129   :  { %v304_v26 = vmul.f32 %v588_v24, %v290_v23  ;;  %v590_v28 = vpop.eup %589 }
 0x12a   :  { %v307_v30 = vsub.f32 1.0, %v590_v28  ;;  %v309_v33 = vmul.f32 %v590_v28, %v40_v29 }
 0x12b   :  { %v305_v27 = vadd.f32 %v304_v26, %v288_v25 }
 0x12d   :  { %591 = vtanh.f32 %v305_v27 }
 0x137   :  { %v592_v31 = vpop.eup %591 }
 0x138   :  { %v308_v32 = vmul.f32 %v592_v31, %v307_v30 }
 0x13a   :  { %v310_v34 = vadd.f32 %v309_v33, %v308_v32 }
 0x13c   :  { %311 = vst [vmem:[%s794_s7] sm:$0xf] %v310_v34  ;;  %485 = vmatmul.mubr.f32.vlgmr.msra.gmra.mrb[2].mxu0 %v310_v34 }
 0x20f   :  { %v401_v36 = vpop.f32.mrb[2].mxu0 }
 0x210   :  { %v402_v37 = vadd.f32 %v434_v35, %v401_v36  ;;  %v486_v38 = vpop.f32.mrb[3].mxu0 }
 0x212   :  { %406 = vst.msk [vmem:[#allocation5] sm:$0xf] %vm405_vm3, %v402_v37 }
 0x213   :  { %626 = shalt.err (!%p623_p12)
}
 0x214   :  { %s627_s8 = scalar_lea.hbm %s793_s6, 64 }
 0x215   :  { %p628_p13 = scmp.ne.s32.totalorder %s793_s6, %s627_s8  ;;  %p631_p0 = scmp.lt.u32.totalorder %s627_s8, %s793_s6 }
 0x217   :  { %p633_p1 = pnand %p631_p0, %p628_p13 }
 0x219   :  { %636 = shalt.err (!%p633_p1)
}
 0x21a   :  { %416 = dma.vmem_to_hbm [thread:$0]  %s414_s29, 64, %s793_s6, [#allocation4]  }
 0x21b   :  { %639 = dma.done.wait [#allocation4], 64  }
 0x21c   :  { %640 = vsyncadd [#allocation4], 4294967232 }
 0x21d   :  { %424 = vsyncpa [#allocation3], 1 }
 0x21e   :  { %425 = vsyncpa [#allocation4], 1 }

</bundles_post_ra>
